<compile_context>
chip_gen: v6e
topology: v6e:2x2x1
jax: 0.10.0
libtpu: 0.0.40
codegen_flags: <defaults>
</compile_context>

<pallas_src>
import functools

import jax
import jax.numpy as jnp
from jax.experimental import pallas as pl
from jax.experimental.pallas import tpu as pltpu


_MIN_BLOCK_ELEMS = 128 * 1024   # block-size floor (~512 KiB of f32)
_PREF_GRID_STEPS = 16           # prefer >= 8 steps per TensorCore on v7x


def _round_up(x, m):
    return ((x + m - 1) // m) * m


def _round_down(x, m):
    return max(m, (x // m) * m)


def _sublane_pack(dtype):
    # packed sublane count: 8 for 4-byte, 16 for 2-byte, 32 for 1-byte dtypes
    return 8 * max(1, 4 // jnp.dtype(dtype).itemsize)


def _prefer_divisor(total, tile, unit):
    """Largest multiple of `unit` <= tile that divides `total`, if one exists
    close enough to `tile`; otherwise keep `tile` (caller pads)."""
    if total % unit == 0:
        t = tile
        while t >= unit and total % t != 0:
            t -= unit
        if t >= max(unit, tile // 2):
            return t
    return tile


def _pad2d(a, rows, cols):
    r, c = a.shape
    if r == rows and c == cols:
        return a
    return jnp.pad(a, ((0, rows - r), (0, cols - c)))


def _hw_budget():
    """Per-generation sizing: (vmem_limit_cap, target_block_elems, max_block_elems).

    v5e/v6e have 128 MiB physical VMEM -> allow ~96 MiB scoped and bigger
    blocks / a higher single-pass threshold (avoids the 1.5x-traffic two-pass
    path, which hurts most on v5e's low HBM BW).  v7x has 64 MiB per-TC VMEM
    -> cap at 48 MiB but still use ~4 MiB f32 x blocks to amortize per-step
    overhead at 3.2 TB/s.
    """
    try:
        vmem_cap = int(pltpu.get_tpu_info().vmem_capacity_bytes)
    except Exception:
        vmem_cap = 64 << 20  # conservative: assume v7x-sized VMEM
    if vmem_cap >= (100 << 20):          # v5e / v6e
        return (96 << 20, 2 * 1024 * 1024, 3 * 1024 * 1024)
    else:                                 # v7x (or unknown)
        return (48 << 20, 1024 * 1024, 3 * 512 * 1024)


def _choose_row_tile(R, hw, pack, target_elems):
    r_ceil = _round_up(max(R, 1), pack)
    hw = max(hw, 1)
    rows_target = max(1, target_elems // hw)            # ~target block size
    rows_min = max(1, _MIN_BLOCK_ELEMS // hw)            # block-size floor
    rows_steps = max(1, r_ceil // _PREF_GRID_STEPS)      # prefer >= 16 steps
    rows = min(rows_target, max(rows_steps, rows_min))
    # megacore occupancy: always allow >= 2 row-grid steps when R permits
    if r_ceil >= 2 * pack:
        rows = min(rows, r_ceil // 2)
    rows = min(max(_round_down(rows, pack), pack), r_ceil)
    rows = _prefer_divisor(R, rows, pack)                 # avoid a pad copy
    return rows


def _vmem_limit(nbytes, cap):
    return int(min(max(nbytes, 16 << 20), cap))


# ---------------------------------------------------------------------------
# Kernels
# ---------------------------------------------------------------------------

def _adain_rows_kernel(x_ref, g_ref, b_ref, o_ref, *, eps, hw):
    """Single-pass: x_ref is a (row_tile, HW_pad) block; g_ref/b_ref are
    (row_tile, 1) f32 blocks.  Zero-padded columns contribute nothing to the
    sum / sum-of-squares, so the true-HW divisors keep the stats exact."""
    x = x_ref[...].astype(jnp.float32)
    s1 = jnp.sum(x, axis=-1, keepdims=True)
    s2 = jnp.sum(x * x, axis=-1, keepdims=True)
    mean = s1 * jnp.float32(1.0 / hw)
    # torch.var default is unbiased (divide by HW - 1); HW == 1 intentionally
    # yields NaN, exactly like the PyTorch module.
    inv_denom = 1.0 / (hw - 1) if hw > 1 else float("nan")
    var = jnp.maximum((s2 - mean * s1) * jnp.float32(inv_denom), 0.0)
    inv_std = jax.lax.rsqrt(var + jnp.float32(eps))
    # Fold gamma/beta into one per-row scale/shift: out = x * scale + shift.
    scale = inv_std * g_ref[...]
    shift = b_ref[...] - mean * scale
    o_ref[...] = (x * scale + shift).astype(o_ref.dtype)


def _adain_stats_kernel(x_ref, g_ref, b_ref, scale_ref, shift_ref,
                        sum_sc, sq_sc, *, eps, hw):
    """Two-pass / pass 1: accumulate sum and sum-of-squares over column tiles,
    emit per-row (scale, shift) at the last column step."""
    j = pl.program_id(1)

    @pl.when(j == 0)
    def _():
        sum_sc[...] = jnp.zeros_like(sum_sc)
        sq_sc[...] = jnp.zeros_like(sq_sc)

    x = x_ref[...].astype(jnp.float32)
    sum_sc[...] += jnp.sum(x, axis=-1, keepdims=True)
    sq_sc[...] += jnp.sum(x * x, axis=-1, keepdims=True)

    g = g_ref[...]
    b = b_ref[...]

    @pl.when(j == pl.num_programs(1) - 1)
    def _():
        s1 = sum_sc[...]
        mean = s1 * jnp.float32(1.0 / hw)
        inv_denom = 1.0 / (hw - 1) if hw > 1 else float("nan")
        var = jnp.maximum((sq_sc[...] - mean * s1) * jnp.float32(inv_denom), 0.0)
        inv_std = jax.lax.rsqrt(var + jnp.float32(eps))
        scale = inv_std * g
        scale_ref[...] = scale
        shift_ref[...] = b - mean * scale


def _adain_apply_kernel(x_ref, scale_ref, shift_ref, o_ref):
    """Two-pass / pass 2: out = x * scale + shift."""
    x = x_ref[...].astype(jnp.float32)
    o_ref[...] = (x * scale_ref[...] + shift_ref[...]).astype(o_ref.dtype)


# ---------------------------------------------------------------------------
# Wrappers
# ---------------------------------------------------------------------------

def _adain_single_pass(x2, g2, b2, eps, pack, itemsize, row_tile,
                       vmem_cap, target_elems):
    R, HW = x2.shape
    HW_pad = _round_up(HW, 128)        # lane-dense loads/stores
    if row_tile is None:
        row_tile = _choose_row_tile(R, HW_pad, pack, target_elems)
    else:
        row_tile = max(pack, _round_down(row_tile, pack))
    R_pad = _round_up(R, row_tile)

    x2 = _pad2d(x2, R_pad, HW_pad)
    g2 = _pad2d(g2, R_pad, 1)
    b2 = _pad2d(b2, R_pad, 1)

    blk = row_tile * HW_pad
    # 2x double-buffered in + 2x double-buffered out + ~3 blk f32 temporaries
    vmem = _vmem_limit(4 * blk * itemsize + 3 * blk * 4 + (2 << 20), vmem_cap)
    cost = pl.CostEstimate(flops=6 * R * HW, transcendentals=R,
                           bytes_accessed=2 * R_pad * HW_pad * itemsize)

    kernel = functools.partial(_adain_rows_kernel, eps=eps, hw=HW)
    out2 = pl.pallas_call(
        kernel,
        out_shape=jax.ShapeDtypeStruct((R_pad, HW_pad), x2.dtype),
        grid_spec=pltpu.PrefetchScalarGridSpec(
            num_scalar_prefetch=0,
            grid=(R_pad // row_tile,),
            in_specs=[
                pl.BlockSpec((row_tile, HW_pad), lambda i: (i, 0)),
                pl.BlockSpec((row_tile, 1), lambda i: (i, 0)),   # gamma
                pl.BlockSpec((row_tile, 1), lambda i: (i, 0)),   # beta
            ],
            out_specs=pl.BlockSpec((row_tile, HW_pad), lambda i: (i, 0)),
        ),
        compiler_params=pltpu.CompilerParams(
            dimension_semantics=("parallel",),
            vmem_limit_bytes=vmem,
        ),
        cost_estimate=cost,
    )(x2, g2, b2)
    return out2


def _adain_two_pass(x2, g2, b2, eps, pack, itemsize, row_tile, col_tile,
                    vmem_cap, target_elems):
    R, HW = x2.shape
    r_ceil = _round_up(max(R, 1), pack)
    if row_tile is None:
        row_tile = max(pack, _round_down(min(r_ceil, 256), pack))
        if r_ceil >= 2 * pack:                      # keep >= 2 row-grid steps
            row_tile = min(row_tile, max(pack, _round_down(r_ceil // 2, pack)))
        row_tile = _prefer_divisor(R, row_tile, pack)
    else:
        row_tile = max(pack, _round_down(row_tile, pack))
    if col_tile is None:
        col_tile = max(128, _round_down(target_elems // row_tile, 128))
        col_tile = min(col_tile, _round_up(HW, 128))
        col_tile = _prefer_divisor(HW, col_tile, 128)
    else:
        col_tile = max(128, _round_down(col_tile, 128))

    R_pad = _round_up(R, row_tile)
    HW_pad = _round_up(HW, col_tile)

    # zero-padded columns do not perturb sum / sum-of-squares, so the stats
    # computed with the true HW stay exact.
    x2 = _pad2d(x2, R_pad, HW_pad)
    g2 = _pad2d(g2, R_pad, 1)
    b2 = _pad2d(b2, R_pad, 1)

    grid = (R_pad // row_tile, HW_pad // col_tile)
    blk = row_tile * col_tile
    gb_spec = pl.BlockSpec((row_tile, 1), lambda i, j: (i, 0))

    # ---- pass 1: per-row statistics -> (scale, shift) ----
    # TODO(synk): E[x^2]-mean*sum in f32 can lose precision when |mean| >> std;
    # use a per-tile two-sweep + Chan merge if tighter tolerances are needed.
    stats_kernel = functools.partial(_adain_stats_kernel, eps=eps, hw=HW)
    vmem1 = _vmem_limit(2 * blk * itemsize + 2 * blk * 4 + (2 << 20), vmem_cap)
    cost1 = pl.CostEstimate(flops=3 * R * HW, transcendentals=R,
                            bytes_accessed=R_pad * HW_pad * itemsize)
    scale2, shift2 = pl.pallas_call(
        stats_kernel,
        out_shape=(
            jax.ShapeDtypeStruct((R_pad, 1), jnp.float32),
            jax.ShapeDtypeStruct((R_pad, 1), jnp.float32),
        ),
        grid_spec=pltpu.PrefetchScalarGridSpec(
            num_scalar_prefetch=0,
            grid=grid,
            in_specs=[
                pl.BlockSpec((row_tile, col_tile), lambda i, j: (i, j)),
                gb_spec,   # gamma
                gb_spec,   # beta
            ],
            out_specs=[
                pl.BlockSpec((row_tile, 1), lambda i, j: (i, 0)),
                pl.BlockSpec((row_tile, 1), lambda i, j: (i, 0)),
            ],
            scratch_shapes=[
                pltpu.VMEM((row_tile, 1), jnp.float32),
                pltpu.VMEM((row_tile, 1), jnp.float32),
            ],
        ),
        compiler_params=pltpu.CompilerParams(
            dimension_semantics=("parallel", "arbitrary"),
            vmem_limit_bytes=vmem1,
        ),
        cost_estimate=cost1,
    )(x2, g2, b2)

    # ---- pass 2: out = x * scale + shift ----
    vmem2 = _vmem_limit(4 * blk * itemsize + 2 * blk * 4 + (2 << 20), vmem_cap)
    cost2 = pl.CostEstimate(flops=2 * R * HW, transcendentals=0,
                            bytes_accessed=2 * R_pad * HW_pad * itemsize)
    out2 = pl.pallas_call(
        _adain_apply_kernel,
        out_shape=jax.ShapeDtypeStruct((R_pad, HW_pad), x2.dtype),
        grid_spec=pltpu.PrefetchScalarGridSpec(
            num_scalar_prefetch=0,
            grid=grid,
            in_specs=[
                pl.BlockSpec((row_tile, col_tile), lambda i, j: (i, j)),
                gb_spec,   # scale
                gb_spec,   # shift
            ],
            out_specs=pl.BlockSpec((row_tile, col_tile), lambda i, j: (i, j)),
        ),
        compiler_params=pltpu.CompilerParams(
            dimension_semantics=("parallel", "parallel"),
            vmem_limit_bytes=vmem2,
        ),
        cost_estimate=cost2,
    )(x2, scale2, shift2)
    return out2


def adain(x, gamma, beta, eps=1e-5, *, row_tile=None, col_tile=None,
          max_single_pass_hw=None):
    """AdaIN forward.  x: (N, C, H, W); gamma/beta: (N, C)."""
    N, C, H, W = x.shape
    R = N * C
    HW = H * W
    pack = _sublane_pack(x.dtype)
    itemsize = jnp.dtype(x.dtype).itemsize

    vmem_cap, target_elems, max_elems = _hw_budget()
    if max_single_pass_hw is None:
        # beyond this, even a pack-row block exceeds the per-block budget
        max_single_pass_hw = max_elems // pack

    x2 = x.reshape(R, HW)
    g2 = gamma.reshape(R, 1).astype(jnp.float32)
    b2 = beta.reshape(R, 1).astype(jnp.float32)

    if HW <= max_single_pass_hw:
        out2 = _adain_single_pass(x2, g2, b2, eps, pack, itemsize, row_tile,
                                  vmem_cap, target_elems)
    else:
        out2 = _adain_two_pass(x2, g2, b2, eps, pack, itemsize, row_tile,
                               col_tile, vmem_cap, target_elems)
    return out2[:R, :HW].reshape(N, C, H, W)


def adain_ref(x, gamma, beta, eps=1e-5):
    """Pure-JAX reference mirroring the PyTorch forward exactly."""
    mean = jnp.mean(x, axis=(2, 3), keepdims=True)
    var = jnp.var(x, axis=(2, 3), keepdims=True, ddof=1)  # unbiased like torch
    out = (x - mean) / jnp.sqrt(var + eps)
    return out * gamma[:, :, None, None] + beta[:, :, None, None]


if __name__ == "__main__":
    key = jax.random.PRNGKey(0)
    kx, kg, kb = jax.random.split(key, 3)

    # Primary shape from the module spec: N=2, C=4, H=W=16 (single-pass path).
    N, C, H, W = 2, 4, 16, 16
    x = jax.random.normal(kx, (N, C, H, W), dtype=jnp.float32)
    gamma = jax.random.normal(kg, (N, C), dtype=jnp.float32)
    beta = jax.random.normal(kb, (N, C), dtype=jnp.float32)

    out = jax.block_until_ready(adain(x, gamma, beta))
    ref = adain_ref(x, gamma, beta)
    assert out.shape == (N, C, H, W)
    assert jnp.allclose(out, ref, atol=1e-5, rtol=1e-5), "single-pass mismatch"

    # Ragged spatial size (HW=49 -> lane-padded to 128): exercises the
    # zero-pad + true-HW-divisor stats path.
    k1x, k1g, k1b = jax.random.split(jax.random.PRNGKey(2), 3)
    xr = jax.random.normal(k1x, (2, 4, 7, 7), dtype=jnp.float32)
    gr = jax.random.normal(k1g, (2, 4), dtype=jnp.float32)
    br = jax.random.normal(k1b, (2, 4), dtype=jnp.float32)
    outr = jax.block_until_ready(adain(xr, gr, br))
    refr = adain_ref(xr, gr, br)
    assert jnp.allclose(outr, refr, atol=1e-5, rtol=1e-5), "ragged-HW mismatch"

    # Exercise the column-tiled two-pass path (threshold forced low).
    k2x, k2g, k2b = jax.random.split(jax.random.PRNGKey(1), 3)
    x2 = jax.random.normal(k2x, (2, 8, 32, 32), dtype=jnp.float32)
    g2 = jax.random.normal(k2g, (2, 8), dtype=jnp.float32)
    b2 = jax.random.normal(k2b, (2, 8), dtype=jnp.float32)
    out2 = jax.block_until_ready(
        adain(x2, g2, b2, max_single_pass_hw=256, row_tile=8, col_tile=256))
    ref2 = adain_ref(x2, g2, b2)
    assert jnp.allclose(out2, ref2, atol=1e-4, rtol=1e-4), "two-pass mismatch"

    # bf16 input: packed-sublane row tile (16) + ragged-row padding path.
    xb = x.astype(jnp.bfloat16)
    outb = jax.block_until_ready(adain(xb, gamma, beta))
    refb = adain_ref(xb.astype(jnp.float32), gamma, beta)
    assert jnp.allclose(outb.astype(jnp.float32), refb,
                        atol=2e-2, rtol=2e-2), "bf16 mismatch"

    print("KERNEL_OK")
</pallas_src>

<mosaic_0001>
module attributes {stable_mosaic.version = 11 : i64} {
  func.func @_adain_rows_kernel(%arg0: i32, %arg1: memref<8x256xf32, #tpu.memory_space<vmem>>, %arg2: memref<8x1xf32, #tpu.memory_space<vmem>>, %arg3: memref<8x1xf32, #tpu.memory_space<vmem>>, %arg4: memref<8x256xf32, #tpu.memory_space<vmem>>) attributes {dimension_semantics = [#tpu.dimension_semantics<parallel>], iteration_bounds = array<i64: 1>, scalar_prefetch = 0 : i64, scratch_operands = 0 : i64, tpu.core_type = #tpu.core_type<tc>, window_params = [{transform_indices = @transform_0, window_bounds = array<i64: 8, 256>}, {transform_indices = @transform_1, window_bounds = array<i64: 8, 1>}, {transform_indices = @transform_2, window_bounds = array<i64: 8, 1>}, {transform_indices = @transform_3, window_bounds = array<i64: 8, 256>}]} {
    %c0 = arith.constant 0 : index
    %c0_0 = arith.constant 0 : index
    %0 = vector.load %arg1[%c0, %c0_0] : memref<8x256xf32, #tpu.memory_space<vmem>>, vector<8x256xf32>
    %cst = arith.constant dense<0.000000e+00> : vector<8xf32>
    %1 = vector.multi_reduction <add>, %0, %cst [1] : vector<8x256xf32> to vector<8xf32>
    %2 = vector.shape_cast %1 : vector<8xf32> to vector<8x1xf32>
    %3 = arith.mulf %0, %0 : vector<8x256xf32>
    %cst_1 = arith.constant dense<0.000000e+00> : vector<8xf32>
    %4 = vector.multi_reduction <add>, %3, %cst_1 [1] : vector<8x256xf32> to vector<8xf32>
    %5 = vector.shape_cast %4 : vector<8xf32> to vector<8x1xf32>
    %cst_2 = arith.constant 3.906250e-03 : f32
    %6 = vector.broadcast %cst_2 : f32 to vector<8x1xf32>
    %7 = arith.mulf %2, %6 : vector<8x1xf32>
    %8 = arith.mulf %7, %2 : vector<8x1xf32>
    %9 = arith.subf %5, %8 : vector<8x1xf32>
    %cst_3 = arith.constant 0.00392156886 : f32
    %10 = vector.broadcast %cst_3 : f32 to vector<8x1xf32>
    %11 = arith.mulf %9, %10 : vector<8x1xf32>
    %cst_4 = arith.constant 0.000000e+00 : f32
    %12 = vector.broadcast %cst_4 : f32 to vector<8x1xf32>
    %13 = arith.maximumf %11, %12 : vector<8x1xf32>
    %cst_5 = arith.constant 9.99999974E-6 : f32
    %14 = vector.broadcast %cst_5 : f32 to vector<8x1xf32>
    %15 = arith.addf %13, %14 : vector<8x1xf32>
    %16 = math.rsqrt %15 : vector<8x1xf32>
    %c0_6 = arith.constant 0 : index
    %c0_7 = arith.constant 0 : index
    %17 = vector.load %arg2[%c0_6, %c0_7] : memref<8x1xf32, #tpu.memory_space<vmem>>, vector<8x1xf32>
    %18 = arith.mulf %16, %17 : vector<8x1xf32>
    %c0_8 = arith.constant 0 : index
    %c0_9 = arith.constant 0 : index
    %19 = vector.load %arg3[%c0_8, %c0_9] : memref<8x1xf32, #tpu.memory_space<vmem>>, vector<8x1xf32>
    %20 = arith.mulf %7, %18 : vector<8x1xf32>
    %21 = arith.subf %19, %20 : vector<8x1xf32>
    %22 = vector.broadcast %18 : vector<8x1xf32> to vector<8x256xf32>
    %23 = arith.mulf %0, %22 : vector<8x256xf32>
    %24 = vector.broadcast %21 : vector<8x1xf32> to vector<8x256xf32>
    %25 = arith.addf %23, %24 : vector<8x256xf32>
    %c0_10 = arith.constant 0 : index
    %c0_11 = arith.constant 0 : index
    %26 = vector.load %arg4[%c0_10, %c0_11] : memref<8x256xf32, #tpu.memory_space<vmem>>, vector<8x256xf32>
    tpu.vector_store %arg4[%c0_10, %c0_11], %25 {strides = array<i32>} : memref<8x256xf32, #tpu.memory_space<vmem>>, vector<8x256xf32>,
    return
  }
  func.func @transform_0(%arg0: i32) -> (i32, i32) {
    %c0_i32 = arith.constant 0 : i32
    %c0_i32_0 = arith.constant 0 : i32
    return %arg0, %c0_i32 : i32, i32
  }
  func.func @transform_1(%arg0: i32) -> (i32, i32) {
    %c0_i32 = arith.constant 0 : i32
    %c0_i32_0 = arith.constant 0 : i32
    return %arg0, %c0_i32 : i32, i32
  }
  func.func @transform_2(%arg0: i32) -> (i32, i32) {
    %c0_i32 = arith.constant 0 : i32
    %c0_i32_0 = arith.constant 0 : i32
    return %arg0, %c0_i32 : i32, i32
  }
  func.func @transform_3(%arg0: i32) -> (i32, i32) {
    %c0_i32 = arith.constant 0 : i32
    %c0_i32_0 = arith.constant 0 : i32
    return %arg0, %c0_i32 : i32, i32
  }
}

</mosaic_0001>

<bundles_post_ra>
// kernel: tpu_custom_call.1
= control target key start
LH: loop header
LB: loop body
LE: loop exit
PB: predicated region body
PF: predicated region fallthrough
CT: control target
= control target key end

     0   :  { %s132_s0 = inlined_call_operand.vmem [shape: f32[8,256], index: 0, kind: input, shape index: {}]   ;;  %s133_s1 = inlined_call_operand.vmem [shape: f32[8,1], index: 1, kind: input, shape index: {}]   ;;  %s134_s2 = inlined_call_operand.vmem [shape: f32[8,1], index: 2, kind: input, shape index: {}]   ;;  %s135_s3 = inlined_call_operand.hbm [shape: f32[8,256], index: 3, kind: output, shape index: {}]  }
   0x1   :  { %v15_v0 = vld [vmem:[%s132_s0] sm:$0xff]  ;;  %v16_v1 = vld [vmem:[%s132_s0 + $0x8] sm:$0xff] }
   0x2   :  { %8 = vsyncpa [#allocation3], 0  ;;  %v17_v2 = vadd.f32 %v16_v1, %v15_v0  ;;  %v20_v3 = vmul.f32 %v15_v0, %v15_v0  ;;  %v21_v4 = vmul.f32 %v16_v1, %v16_v1  ;;  %v95_v6 = vmov 0   ;;  %v32_v15 = vld [vmem:[%s133_s1] sm:$0xff]  ;;  %s96_s19 = smov [#allocation2]  }
   0x3   :  { %69 = vset.pattern.permute.xlu1 %v95_v6  ;;  %70 = vset.pattern.permute.xlu0 %v95_v6  ;;  %v34_v18 = vld [vmem:[%s134_s2] sm:$0xff]  ;;  %s59_s20 = sshll.u32 %s96_s19, 4  ;;  %s60_s20 = int_to_ptr.vmem [resolvable:$true] %s59_s20 }
   0x4   :  { %18 = vadd.xlane.f32.xlu0 %v17_v2  ;;  %v22_v5 = vadd.f32 %v21_v4, %v20_v3  ;;  %s73_s1 = scalar_lea.vmem %s60_s20, 256  ;;  %p78_p1 = scmp.lt.s32.totalorder %s60_s20, %s60_s20 }
   0x5   :  { %p74_p0 = scmp.ne.s32.totalorder %s60_s20, %s73_s1  ;;  %p79_p2 = scmp.lt.s32.totalorder %s73_s1, %s73_s1 }
   0x7   :  { %p80_p3 = por %p79_p2, %p78_p1 }
   0x8   :  { %23 = vadd.xlane.f32.xlu0 %v22_v5 }
   0x9   :  { %p81_p4 = pnand %p80_p3, %p74_p0 }
  0x8d   :  { %v19_v7 = vpop.xlane.xlu0 %18 }
  0x8e   :  { %v25_v8 = vmul.f32 0.00390625, %v19_v7 }
  0x90   :  { %v26_v9 = vmul.f32 %v25_v8, %v19_v7 }
  0x91   :  { %v24_v10 = vpop.xlane.xlu0 %23 }
  0x92   :  { %v27_v11 = vsub.f32 %v24_v10, %v26_v9 }
  0x94   :  { %v28_v12 = vmul.f32 0.003921569, %v27_v11 }
  0x96   :  { %v29_v13 = vmax.f32 %v28_v12, 0.0 }
  0x98   :  { %v30_v14 = vadd.f32 1e-05, %v29_v13 }
  0x9a   :  { %71 = vrsqrt.f32 %v30_v14 }
  0xa7   :  { %v72_v16 = vpop.eup %71 }
  0xa8   :  { %v33_v17 = vmul.f32 %v72_v16, %v32_v15 }
  0xaa   :  { %39 = vperm.xlu1 %69, %v33_v17   ;;  %v35_v19 = vmul.f32 %v33_v17, %v25_v8 }
  0xac   :  { %v36_v20 = vsub.f32 %v34_v18, %v35_v19 }
  0xae   :  { %46 = vperm.xlu1 %69, %v36_v20  }
 0x125   :  { %v40_v21 = vpop.permute.xlu1 %39 }
 0x126   :  { %v42_v22 = vmul.f32 %v40_v21, %v15_v0  ;;  %v43_v23 = vmul.f32 %v40_v21, %v16_v1 }
 0x129   :  { %v47_v24 = vpop.permute.xlu1 %46 }
 0x12a   :  { %v49_v25 = vadd.f32 %v47_v24, %v42_v22  ;;  %v50_v26 = vadd.f32 %v47_v24, %v43_v23 }
 0x12c   :  { %51 = vst [vmem:[#allocation2] sm:$0xff] %v49_v25  ;;  %52 = vst [vmem:[#allocation2 + $0x8] sm:$0xff] %v50_v26 }
 0x12d   :  { %84 = shalt.err (!%p81_p4)
}
 0x12e   :  { %62 = dma.vmem_to_hbm [thread:$0]  %s60_s20, 256, %s135_s3, [#allocation3]  }
 0x12f   :  { %93 = dma.done.wait [#allocation3], 256  }
 0x130   :  { %94 = vsyncadd [#allocation3], 4294967040 }
 0x131   :  { %66 = vsyncpa [#allocation3], 1 }

</bundles_post_ra>
